<compile_context>
chip_gen: v7x
topology: tpu7x:2x2x1
jax: 0.10.0
libtpu: 0.0.40
codegen_flags: <defaults>
</compile_context>

<pallas_src>
import jax
import jax.numpy as jnp
import numpy as np
from jax.experimental import pallas as pl
from jax.experimental.pallas import tpu as pltpu


def _round_up(a: int, b: int) -> int:
    return ((a + b - 1) // b) * b


# ----------------------------------------------------------------------------- kernels
def _phase1_kernel(x_ref, he_ref, cs_ref, wx_ref, wh_ref, bi_ref, mpart_ref):
    """Per E-tile: h_n = relu(x@Wx + h_e@Wh + b_i) (kept in VMEM only);
    emit the tile's partial of m = colsum @ h_n."""
    acc = jnp.dot(x_ref[...], wx_ref[...], preferred_element_type=jnp.float32)
    acc = acc + jnp.dot(he_ref[...], wh_ref[...], preferred_element_type=jnp.float32)
    h_n = jnp.maximum(acc + bi_ref[...], 0.0)                               # (TE, D) f32
    p = jnp.dot(cs_ref[...], h_n, preferred_element_type=jnp.float32)       # (1, D)
    # Sublane-aligned (8, D) output block; the wrapper picks row 0 of each tile.
    mpart_ref[...] = jnp.broadcast_to(p, mpart_ref.shape)


def _phase2_kernel(x_ref, he_ref, delta_ref, wx_ref, wh_ref, bi_ref, out_ref):
    """Per E-tile: recompute h_n and apply h = relu(h_n + (m @ W_m^T + b_m))."""
    acc = jnp.dot(x_ref[...], wx_ref[...], preferred_element_type=jnp.float32)
    acc = acc + jnp.dot(he_ref[...], wh_ref[...], preferred_element_type=jnp.float32)
    h_n = jnp.maximum(acc + bi_ref[...], 0.0)                               # (TE, D) f32
    out_ref[...] = jnp.maximum(h_n + delta_ref[...], 0.0).astype(out_ref.dtype)


# ----------------------------------------------------------------------------- wrapper
def dmpnn_conv(x, h_e, bond_n, w_i, b_i, w_m, b_m, *,
               te: int = 2048, compute_dtype=jnp.bfloat16):
    """x, h_e: (E, D); bond_n: (B, E); w_i: (D, 2D) torch layout; b_i: (D,);
    w_m: (D, D); b_m: (D,). Returns h: (E, D) float32."""
    E, D = x.shape

    # Edge tile: multiple of 128 (lane constraint of the (1, TE) colsum block),
    # capped at ~E/2 so the grid has >= 2 tiles whenever E > 128 (v7x megacore).
    TE = _round_up(min(te, max(pl.cdiv(E, 2), 1)), 128)
    E_pad = _round_up(E, TE)
    num_te = E_pad // TE

    # m depends only on the column sum of bond_n -> collapse it in the wrapper.
    colsum = jnp.sum(bond_n.astype(jnp.float32), axis=0, keepdims=True)      # (1, E)
    if E_pad != E:
        # Zero-padded rows give h_n = relu(b_i) but colsum = 0 there, so m is
        # unaffected; the padded output rows are sliced off at the end.
        colsum = jnp.pad(colsum, ((0, 0), (0, E_pad - E)))
        x = jnp.pad(x, ((0, E_pad - E), (0, 0)))
        h_e = jnp.pad(h_e, ((0, E_pad - E), (0, 0)))
    x_c = x.astype(compute_dtype)
    h_e_c = h_e.astype(compute_dtype)

    # Split W_i (torch layout (D, 2D)) into the x- and h_e- K-slabs, transposed.
    wx = jnp.transpose(w_i[:, :D]).astype(compute_dtype)                     # (D, D)
    wh = jnp.transpose(w_i[:, D:]).astype(compute_dtype)                     # (D, D)
    bi = b_i.reshape(1, D).astype(jnp.float32)                               # (1, D)

    cparams = pltpu.CompilerParams(dimension_semantics=("parallel",))

    edge_spec = pl.BlockSpec((TE, D), lambda i: (i, 0))                      # streamed
    w_spec = pl.BlockSpec((D, D), lambda i: (0, 0))                          # resident
    vec_spec = pl.BlockSpec((1, D), lambda i: (0, 0))                        # resident

    # -------- Phase 1: stream E-tiles, emit per-tile partial m ---------------------
    m_part = pl.pallas_call(
        _phase1_kernel,
        out_shape=jax.ShapeDtypeStruct((num_te * 8, D), jnp.float32),
        grid=(num_te,),
        in_specs=[
            edge_spec,                                     # x tile
            edge_spec,                                     # h_e tile
            pl.BlockSpec((1, TE), lambda i: (0, i)),       # colsum tile
            w_spec, w_spec, vec_spec,                      # W_x, W_h, b_i
        ],
        out_specs=pl.BlockSpec((8, D), lambda i: (i, 0)),
        compiler_params=cparams,
    )(x_c, h_e_c, colsum, wx, wh, bi)

    # -------- Finalize global reduction + tiny (1,D)@(D,D) epilogue matmul, once ---
    m = jnp.sum(m_part.reshape(num_te, 8, D)[:, 0, :], axis=0)               # (D,)
    delta = (m @ jnp.transpose(w_m) + b_m).reshape(1, D).astype(jnp.float32) # (1, D)

    # -------- Phase 2: re-stream tiles, recompute h_n, apply broadcast epilogue ----
    h = pl.pallas_call(
        _phase2_kernel,
        out_shape=jax.ShapeDtypeStruct((E_pad, D), jnp.float32),
        grid=(num_te,),
        in_specs=[edge_spec, edge_spec, vec_spec, w_spec, w_spec, vec_spec],
        out_specs=edge_spec,
        compiler_params=cparams,
    )(x_c, h_e_c, delta, wx, wh, bi)

    return h[:E] if E_pad != E else h


# ----------------------------------------------------------------------------- reference
def dmpnn_ref(x, h_e, bond_n, w_i, b_i, w_m, b_m):
    """Pure-JAX reference mirroring the PyTorch forward."""
    h_n = jax.nn.relu(jnp.concatenate([x, h_e], axis=1) @ w_i.T + b_i)
    m = jnp.sum(bond_n[:, :, None] * h_n[None, :, :], axis=1).sum(axis=0)
    return jax.nn.relu(h_n + (m @ w_m.T + b_m))


if __name__ == "__main__":
    emb_dim = 32   # D
    E = 200        # number of directed edges (not a tile multiple -> exercises padding)
    B = 16         # number of nodes

    key = jax.random.PRNGKey(0)
    kx, ke, kb, kwi, kbi, kwm, kbm = jax.random.split(key, 7)

    x = jax.random.normal(kx, (E, emb_dim), dtype=jnp.float32)
    h_e = jax.random.normal(ke, (E, emb_dim), dtype=jnp.float32)
    bond_n = (jax.random.uniform(kb, (B, E)) > 0.7).astype(jnp.float32)

    # PyTorch Linear default init: U(-1/sqrt(fan_in), 1/sqrt(fan_in))
    lim_i = 1.0 / np.sqrt(2 * emb_dim)
    lim_m = 1.0 / np.sqrt(emb_dim)
    w_i = jax.random.uniform(kwi, (emb_dim, 2 * emb_dim), minval=-lim_i, maxval=lim_i)
    b_i = jax.random.uniform(kbi, (emb_dim,), minval=-lim_i, maxval=lim_i)
    w_m = jax.random.uniform(kwm, (emb_dim, emb_dim), minval=-lim_m, maxval=lim_m)
    b_m = jax.random.uniform(kbm, (emb_dim,), minval=-lim_m, maxval=lim_m)

    ref = dmpnn_ref(x, h_e, bond_n, w_i, b_i, w_m, b_m)

    # f32 operands -> tight numerical check (default te=2048 still yields 2 edge tiles).
    out_f32 = dmpnn_conv(x, h_e, bond_n, w_i, b_i, w_m, b_m,
                         compute_dtype=jnp.float32)
    out_f32 = jax.block_until_ready(out_f32)
    np.testing.assert_allclose(np.asarray(out_f32), np.asarray(ref), rtol=1e-4, atol=1e-4)

    # bf16 default path (halved input HBM reads); loose relative-error smoke check.
    out_bf16 = dmpnn_conv(x, h_e, bond_n, w_i, b_i, w_m, b_m)
    out_bf16 = jax.block_until_ready(out_bf16)
    ref_np = np.asarray(ref)
    rel_err = np.linalg.norm(np.asarray(out_bf16) - ref_np) / np.linalg.norm(ref_np)
    assert np.isfinite(rel_err) and rel_err < 0.05, f"bf16 path rel err {rel_err}"

    print("KERNEL_OK")
</pallas_src>

<mosaic_0001>
module attributes {stable_mosaic.version = 11 : i64} {
  func.func @_phase1_kernel(%arg0: i32, %arg1: memref<128x32xf32, #tpu.memory_space<vmem>>, %arg2: memref<128x32xf32, #tpu.memory_space<vmem>>, %arg3: memref<1x128xf32, #tpu.memory_space<vmem>>, %arg4: memref<32x32xf32, #tpu.memory_space<vmem>>, %arg5: memref<32x32xf32, #tpu.memory_space<vmem>>, %arg6: memref<1x32xf32, #tpu.memory_space<vmem>>, %arg7: memref<8x32xf32, #tpu.memory_space<vmem>>) attributes {dimension_semantics = [#tpu.dimension_semantics<parallel>], iteration_bounds = array<i64: 2>, scalar_prefetch = 0 : i64, scratch_operands = 0 : i64, tpu.core_type = #tpu.core_type<tc>, window_params = [{transform_indices = @transform_0, window_bounds = array<i64: 128, 32>}, {transform_indices = @transform_1, window_bounds = array<i64: 128, 32>}, {transform_indices = @transform_2, window_bounds = array<i64: 1, 128>}, {pipeline_mode = #tpu.pipeline_mode<synchronous>, transform_indices = @transform_3, window_bounds = array<i64: 32, 32>}, {pipeline_mode = #tpu.pipeline_mode<synchronous>, transform_indices = @transform_4, window_bounds = array<i64: 32, 32>}, {pipeline_mode = #tpu.pipeline_mode<synchronous>, transform_indices = @transform_5, window_bounds = array<i64: 1, 32>}, {transform_indices = @transform_6, window_bounds = array<i64: 8, 32>}]} {
    %c0 = arith.constant 0 : index
    %c0_0 = arith.constant 0 : index
    %0 = vector.load %arg1[%c0, %c0_0] : memref<128x32xf32, #tpu.memory_space<vmem>>, vector<128x32xf32>
    %c0_1 = arith.constant 0 : index
    %c0_2 = arith.constant 0 : index
    %1 = vector.load %arg4[%c0_1, %c0_2] : memref<32x32xf32, #tpu.memory_space<vmem>>, vector<32x32xf32>
    %cst = arith.constant dense<0.000000e+00> : vector<128x32xf32>
    %2 = tpu.matmul %0, %1, %cst {dimension_numbers = #tpu.dot_dimension_numbers<[1], [0], [0], [1], [0, 0, 1, 1], [], []>} : vector<128x32xf32>, vector<32x32xf32>, vector<128x32xf32> -> vector<128x32xf32>
    %c0_3 = arith.constant 0 : index
    %c0_4 = arith.constant 0 : index
    %3 = vector.load %arg2[%c0_3, %c0_4] : memref<128x32xf32, #tpu.memory_space<vmem>>, vector<128x32xf32>
    %c0_5 = arith.constant 0 : index
    %c0_6 = arith.constant 0 : index
    %4 = vector.load %arg5[%c0_5, %c0_6] : memref<32x32xf32, #tpu.memory_space<vmem>>, vector<32x32xf32>
    %cst_7 = arith.constant dense<0.000000e+00> : vector<128x32xf32>
    %5 = tpu.matmul %3, %4, %cst_7 {dimension_numbers = #tpu.dot_dimension_numbers<[1], [0], [0], [1], [0, 0, 1, 1], [], []>} : vector<128x32xf32>, vector<32x32xf32>, vector<128x32xf32> -> vector<128x32xf32>
    %6 = arith.addf %2, %5 : vector<128x32xf32>
    %c0_8 = arith.constant 0 : index
    %c0_9 = arith.constant 0 : index
    %7 = vector.load %arg6[%c0_8, %c0_9] : memref<1x32xf32, #tpu.memory_space<vmem>>, vector<1x32xf32>
    %8 = vector.broadcast %7 : vector<1x32xf32> to vector<128x32xf32>
    %9 = arith.addf %6, %8 : vector<128x32xf32>
    %cst_10 = arith.constant 0.000000e+00 : f32
    %10 = vector.broadcast %cst_10 : f32 to vector<128x32xf32>
    %11 = arith.maximumf %9, %10 : vector<128x32xf32>
    %c0_11 = arith.constant 0 : index
    %c0_12 = arith.constant 0 : index
    %12 = vector.load %arg3[%c0_11, %c0_12] : memref<1x128xf32, #tpu.memory_space<vmem>>, vector<1x128xf32>
    %cst_13 = arith.constant dense<0.000000e+00> : vector<1x32xf32>
    %13 = tpu.matmul %12, %11, %cst_13 {dimension_numbers = #tpu.dot_dimension_numbers<[1], [0], [0], [1], [0, 0, 1, 1], [], []>} : vector<1x128xf32>, vector<128x32xf32>, vector<1x32xf32> -> vector<1x32xf32>
    %14 = vector.shape_cast %13 : vector<1x32xf32> to vector<1x32xf32>
    %15 = vector.broadcast %14 : vector<1x32xf32> to vector<8x32xf32>
    %c0_14 = arith.constant 0 : index
    %c0_15 = arith.constant 0 : index
    %16 = vector.load %arg7[%c0_14, %c0_15] : memref<8x32xf32, #tpu.memory_space<vmem>>, vector<8x32xf32>
    tpu.vector_store %arg7[%c0_14, %c0_15], %15 {strides = array<i32>} : memref<8x32xf32, #tpu.memory_space<vmem>>, vector<8x32xf32>,
    return
  }
  func.func @transform_0(%arg0: i32) -> (i32, i32) {
    %c0_i32 = arith.constant 0 : i32
    %c0_i32_0 = arith.constant 0 : i32
    return %arg0, %c0_i32 : i32, i32
  }
  func.func @transform_1(%arg0: i32) -> (i32, i32) {
    %c0_i32 = arith.constant 0 : i32
    %c0_i32_0 = arith.constant 0 : i32
    return %arg0, %c0_i32 : i32, i32
  }
  func.func @transform_2(%arg0: i32) -> (i32, i32) {
    %c0_i32 = arith.constant 0 : i32
    %c0_i32_0 = arith.constant 0 : i32
    return %c0_i32, %arg0 : i32, i32
  }
  func.func @transform_3(%arg0: i32) -> (i32, i32) {
    %c0_i32 = arith.constant 0 : i32
    %c0_i32_0 = arith.constant 0 : i32
    %c0_i32_1 = arith.constant 0 : i32
    return %c0_i32, %c0_i32_0 : i32, i32
  }
  func.func @transform_4(%arg0: i32) -> (i32, i32) {
    %c0_i32 = arith.constant 0 : i32
    %c0_i32_0 = arith.constant 0 : i32
    %c0_i32_1 = arith.constant 0 : i32
    return %c0_i32, %c0_i32_0 : i32, i32
  }
  func.func @transform_5(%arg0: i32) -> (i32, i32) {
    %c0_i32 = arith.constant 0 : i32
    %c0_i32_0 = arith.constant 0 : i32
    %c0_i32_1 = arith.constant 0 : i32
    return %c0_i32, %c0_i32_0 : i32, i32
  }
  func.func @transform_6(%arg0: i32) -> (i32, i32) {
    %c0_i32 = arith.constant 0 : i32
    %c0_i32_0 = arith.constant 0 : i32
    return %arg0, %c0_i32 : i32, i32
  }
}

</mosaic_0001>

<bundles_post_ra>
// kernel: tpu_custom_call.1
= control target key start
LH: loop header
LB: loop body
LE: loop exit
PB: predicated region body
PF: predicated region fallthrough
CT: control target
= control target key end

     0   :  { %11 = vsyncpa [#allocation3], 0  ;;  %s1556_s0 = inlined_call_operand.vmem [shape: f32[256,32], index: 0, kind: input, shape index: {}]   ;;  %s1557_s1 = inlined_call_operand.vmem [shape: f32[256,32], index: 1, kind: input, shape index: {}]   ;;  %s1558_s2 = inlined_call_operand.vmem [shape: f32[1,256], index: 2, kind: input, shape index: {}]   ;;  %s1559_s3 = inlined_call_operand.vmem [shape: f32[32,32], index: 3, kind: input, shape index: {}]   ;;  %s1560_s4 = inlined_call_operand.vmem [shape: f32[32,32], index: 4, kind: input, shape index: {}]   ;;  %s1561_s5 = inlined_call_operand.vmem [shape: f32[1,32], index: 5, kind: input, shape index: {}]   ;;  %s1562_s6 = inlined_call_operand.hbm [shape: f32[16,32], index: 6, kind: output, shape index: {}]  }
   0x1   :  { %13 = vsyncpa [#allocation3 + $0x1], 0  ;;  %s1327_s21 = smov 0   ;;  %s1329_s22 = smov 0  }
   0x2   :  { %s1331_s23 = smov 0   ;;  %s1333_s24 = smov 0  }
   0x3 LB: > { %s1348_s25 = sadd.s32 4294967295, %s1286_s24   ;;  %s924_s26 = sadd.s32 4294967294, %s1286_s24   ;;  %s1286_s24 = sphi %s1333_s24, %s1568_s24   ;;  %s1282_s23 = sphi %s1331_s23, %s1567_s23   ;;  %s1278_s22 = sphi %s1329_s22, %s1566_s22   ;;  %s1274_s21 = sphi %s1327_s21, %s1565_s21  }
   0x4   : > { %s1352_s27 = sadd.s32 1, %s1286_s24   ;;  %s167_s28 = sadd.s32 1, %s1282_s23 }
   0x5   : > { %s164_s29 = ssub.s32 %s1286_s24, %s1352_s27  ;;  %p177_p0 = scmp.ne.s32.totalorder %s1282_s23, %s1278_s22 }
   0x6   : > { %p165_p1 = scmp.eq.s32.totalorder %s164_s29, 0  ;;  %p178_p2 = scmp.eq.s32.totalorder %s1348_s25, 1 }
   0x7   : > { %p183_p3 = scmp.ne.s32.totalorder %s1278_s22, %s1274_s21  ;;  %p184_p4 = scmp.eq.s32.totalorder %s924_s26, 1 }
   0x8   : > { %s1363_s30 = scalar_select %p165_p1, %s1282_s23, %s167_s28  }
   0x9   : > { %p1365_p5 = por %p178_p2, %p177_p0  ;;  %p1369_p6 = por %p184_p4, %p183_p3 }
   0xa   : > { %p927_p7 = scmp.ge.s32.totalorder %s1286_s24, 1  ;;  %p235_p8 = scmp.lt.s32.totalorder %s1286_s24, 3 }
   0xc   : > { %p236_p9 = pnand %p927_p7, %p235_p8 }
   0xd   : > { %v324_v0 = vld [vmem:[%s1560_s4] sm:$0xff] (!%p236_p9)  ;;  %v325_v1 = vld [vmem:[%s1560_s4 + $0x8] sm:$0xff] (!%p236_p9)  ;;  %s929_s15 = sshll.u32 (!%p236_p9), %s1348_s25, 4  ;;  %v326_v5 = vld [vmem:[%s1560_s4 + $0x10] sm:$0xff] (!%p236_p9)  ;;  %vm328_vm0 = vcmask (!%p236_p9), 261120   ;;  %v1288_v44 = vmov (!%p236_p9), 0.0|0.0  }
   0xe   : > { %239 = sbr.rel (%p236_p9) target bundleno = 507 (0x1fb), region = 44  ;;  %v304_v2 = vld [vmem:[%s1559_s3] sm:$0xff] (!%p236_p9)  ;;  %v1126_v3 = vpack.c.bf16 (!%p236_p9), %v325_v1, %v324_v0  ;;  %v305_v4 = vld [vmem:[%s1559_s3 + $0x8] sm:$0xff] (!%p236_p9)  ;;  %v327_v6 = vld [vmem:[%s1560_s4 + $0x18] sm:$0xff] (!%p236_p9)  ;;  %p274_p10 = scmp.lt.s32.totalorder (!%p236_p9), %s929_s15, 31  ;;  %vm1289_vm1 = vmmov (!%p236_p9), 0  }
   0xf   : > { %v1134_v7 = vpack.c.bf16 (!%p236_p9), %v305_v4, %v304_v2  ;;  %v1130_v8 = vpack.c.bf16 (!%p236_p9), %v327_v6, %v326_v5  ;;  %v306_v9 = vld [vmem:[%s1559_s3 + $0x10] sm:$0xff] (!%p236_p9)  ;;  %v307_v10 = vld [vmem:[%s1559_s3 + $0x18] sm:$0xff] (!%p236_p9)  ;;  %v1290_v45 = vmov (!%p236_p9), 0.0   ;;  %v1478_v48 = vld [vmem:[%s1561_s5] ss:$0 sm:$0xff] (!%p236_p9)  ;;  %p285_p11 = scmp.lt.s32.totalorder (!%p236_p9), %s1348_s25, 1 }
  0x10   : > { %1127 = vmatprep.subr.bf16.mxu1 (!%p236_p9), %v1126_v3  ;;  %v1138_v11 = vpack.c.bf16 (!%p236_p9), %v307_v10, %v306_v9  ;;  %s270_s9 = sand.u32 (!%p236_p9), 1, %s1278_s22  }
  0x11   : > { %1135 = vmatprep.subr.bf16.mxu0 (!%p236_p9), %v1134_v7  ;;  %1129 = vmatpush3.bf16.msra.mxu1 (!%p236_p9), %v1126_v3  ;;  %s928_s10 = sshll.u32 (!%p236_p9), %s270_s9, 3 }
  0x12   : > { %1137 = vmatpush3.bf16.msra.mxu0 (!%p236_p9), %v1134_v7  ;;  %1131 = vmatprep.subr.bf16.mxu1 (!%p236_p9), %v1130_v8  ;;  %s272_s12 = scalar_lea.vmem (!%p236_p9), [#allocation2], %s928_s10 }
  0x13   : > { %1139 = vmatprep.subr.bf16.mxu0 (!%p236_p9), %v1138_v11  ;;  %s844_s13 = sshll.u32 (!%p236_p9), %s272_s12, 4  ;;  %s1515_s13 = int_to_ptr.vmem [resolvable:$true] %s844_s13 }
  0x15   : > { %s1570_s15 = smov (!%p274_p10, %s929_s15), 31  ;;  %1133 = vmatpush3.bf16.msra.mxu1 %v1130_v8 }
  0x16   : > { %s930_s11 = sshll.u32 %s1570_s15, 3  ;;  %1141 = vmatpush3.bf16.msra.mxu0 %v1138_v11  ;;  %1142 = vmatprep.subr.bf16.mxu1 %v1288_v44  ;;  %s1224_s15 = scalar_lea.vmem %s1515_s13, 128 }
  0x17   : > { %s1403_s14 = scalar_lea.vmem %s1557_s1, %s930_s11  ;;  %s1408_s18 = scalar_lea.vmem %s1556_s0, %s930_s11 }
  0x18   : > { %v308_v12 = vld [vmem:[%s1403_s14] sm:$0xff]  ;;  %v309_v14 = vld [vmem:[%s1403_s14 + $0x8] sm:$0xff]  ;;  %v310_v16 = vld [vmem:[%s1403_s14 + $0x10] sm:$0xff]  ;;  %s286_s20 = scalar_select %p285_p11, %s1348_s25, 1 }
  0x19   : > { %v288_v13 = vld [vmem:[%s1408_s18] sm:$0xff]  ;;  %1035 = vmatprep.mubr.msk.f32.mxu1 %vm328_vm0, %v308_v12  ;;  %v289_v15 = vld [vmem:[%s1408_s18 + $0x8] sm:$0xff]  ;;  %v290_v17 = vld [vmem:[%s1408_s18 + $0x10] sm:$0xff]  ;;  %s967_s11 = sshll.u32 %s1348_s25, 7  ;;  %p1225_p12 = scmp.ne.s32.totalorder %s1515_s13, %s1224_s15 }
  0x1a   : > { %1067 = vmatprep.mubr.msk.f32.mxu0 %vm328_vm0, %v288_v13  ;;  %1036 = vmatmul.mubr.msk.f32.vlgmr.msra.gmra.mrb[0].mxu1 %vm328_vm0, %v309_v14  ;;  %v311_v18 = vld [vmem:[%s1403_s14 + $0x18] sm:$0xff]  ;;  %v312_v20 = vld [vmem:[%s1403_s14 + $0x20] sm:$0xff]  ;;  %v313_v22 = vld [vmem:[%s1403_s14 + $0x28] sm:$0xff]  ;;  %s287_s29 = scalar_lea.vmem %s1558_s2, %s286_s20  ;;  %s1513_s17 = scalar_lea.hbm %s1562_s6, %s967_s11 }
  0x1b   : > { %1068 = vmatmul.mubr.msk.f32.vlgmr.msra.gmra.mrb[0].mxu0 %vm328_vm0, %v289_v15  ;;  %1038 = vmatprep.mubr.msk.f32.mxu1 %vm328_vm0, %v310_v16  ;;  %v291_v19 = vld [vmem:[%s1408_s18 + $0x18] sm:$0xff]  ;;  %v292_v21 = vld [vmem:[%s1408_s18 + $0x20] sm:$0xff]  ;;  %v293_v23 = vld [vmem:[%s1408_s18 + $0x28] sm:$0xff]  ;;  %p1226_p13 = pnand %p1225_p12, %p1365_p5  ;;  %s1291_s25 = smov [#allocation2]  }
  0x1c   : > { %1070 = vmatprep.mubr.msk.f32.mxu0 %vm328_vm0, %v290_v17  ;;  %v314_v24 = vld [vmem:[%s1403_s14 + $0x30] sm:$0xff]  ;;  %v315_v26 = vld [vmem:[%s1403_s14 + $0x38] sm:$0xff]  ;;  %v316_v28 = vld [vmem:[%s1403_s14 + $0x40] sm:$0xff]  ;;  %s1228_s19 = sshll.u32 %s1291_s25, 4  ;;  %s1229_s19 = int_to_ptr.vmem [resolvable:$false] %s1228_s19 }
  0x1d   : > { %v294_v25 = vld [vmem:[%s1408_s18 + $0x30] sm:$0xff]  ;;  %v295_v27 = vld [vmem:[%s1408_s18 + $0x38] sm:$0xff]  ;;  %v296_v29 = vld [vmem:[%s1408_s18 + $0x40] sm:$0xff]  ;;  %p1227_p0 = pneg %p1226_p13  ;;  %s1230_s20 = scalar_lea.vmem %s1229_s19, 256 }
  0x1e   : > { %1039 = vmatmul.mubr.msk.f32.gmra.mrb[2].mxu1 %vm328_vm0, %v311_v18  ;;  %v317_v30 = vld [vmem:[%s1403_s14 + $0x48] sm:$0xff]  ;;  %v318_v32 = vld [vmem:[%s1403_s14 + $0x50] sm:$0xff]  ;;  %v319_v34 = vld [vmem:[%s1403_s14 + $0x58] sm:$0xff]  ;;  %p1231_p1 = scmp.lt.s32.totalorder %s1515_s13, %s1229_s19  ;;  %p1232_p2 = scmp.lt.s32.totalorder %s1230_s20, %s1224_s15 }
  0x1f   : > { %1071 = vmatmul.mubr.msk.f32.gmra.mrb[2].mxu0 %vm328_vm0, %v291_v19  ;;  %1041 = vmatprep.mubr.msk.f32.mxu1 %vm328_vm0, %v312_v20  ;;  %v297_v31 = vld [vmem:[%s1408_s18 + $0x48] sm:$0xff]  ;;  %v298_v33 = vld [vmem:[%s1408_s18 + $0x50] sm:$0xff]  ;;  %v299_v35 = vld [vmem:[%s1408_s18 + $0x58] sm:$0xff] }
  0x20   : > { %1073 = vmatprep.mubr.msk.f32.mxu0 %vm328_vm0, %v292_v21  ;;  %v320_v36 = vld [vmem:[%s1403_s14 + $0x60] sm:$0xff]  ;;  %v321_v38 = vld [vmem:[%s1403_s14 + $0x68] sm:$0xff]  ;;  %v322_v40 = vld [vmem:[%s1403_s14 + $0x70] sm:$0xff]  ;;  %p1233_p3 = por %p1232_p2, %p1231_p1 }
  0x21   : > { %v300_v37 = vld [vmem:[%s1408_s18 + $0x60] sm:$0xff]  ;;  %v301_v39 = vld [vmem:[%s1408_s18 + $0x68] sm:$0xff]  ;;  %v302_v41 = vld [vmem:[%s1408_s18 + $0x70] sm:$0xff] }
  0x22   : > { %1042 = vmatmul.mubr.msk.f32.gmra.mrb[4].mxu1 %vm328_vm0, %v313_v22  ;;  %v323_v42 = vld [vmem:[%s1403_s14 + $0x78] sm:$0xff]  ;;  %p1234_p4 = pnand %p1233_p3, %p1227_p0 }
  0x23   : > { %1074 = vmatmul.mubr.msk.f32.gmra.mrb[4].mxu0 %vm328_vm0, %v293_v23  ;;  %1044 = vmatprep.mubr.msk.f32.mxu1 %vm328_vm0, %v314_v24  ;;  %v303_v43 = vld [vmem:[%s1408_s18 + $0x78] sm:$0xff]  ;;  %s831_s18 = scalar_lea.sflag [#allocation3], %s270_s9 }
  0x24   : > { %1076 = vmatprep.mubr.msk.f32.mxu0 %vm328_vm0, %v294_v25 }
  0x26   : > { %1045 = vmatmul.mubr.msk.f32.gmra.mrb[6].mxu1 %vm328_vm0, %v315_v26 }
  0x27   : > { %1077 = vmatmul.mubr.msk.f32.gmra.mrb[6].mxu0 %vm328_vm0, %v295_v27  ;;  %1047 = vmatprep.mubr.msk.f32.mxu1 %vm328_vm0, %v316_v28 }
  0x28   : > { %1079 = vmatprep.mubr.msk.f32.mxu0 %vm328_vm0, %v296_v29 }
  0x2a   : > { %1048 = vmatmul.mubr.msk.f32.gmra.mrb[8].mxu1 %vm328_vm0, %v317_v30 }
  0x2b   : > { %1080 = vmatmul.mubr.msk.f32.gmra.mrb[8].mxu0 %vm328_vm0, %v297_v31  ;;  %1050 = vmatprep.mubr.msk.f32.mxu1 %vm328_vm0, %v318_v32 }
  0x2c   : > { %1082 = vmatprep.mubr.msk.f32.mxu0 %vm328_vm0, %v298_v33 }
  0x2e   : > { %1051 = vmatmul.mubr.msk.f32.gmra.mrb[10].mxu1 %vm328_vm0, %v319_v34 }
  0x2f   : > { %1083 = vmatmul.mubr.msk.f32.gmra.mrb[10].mxu0 %vm328_vm0, %v299_v35  ;;  %1053 = vmatprep.mubr.msk.f32.mxu1 %vm328_vm0, %v320_v36 }
  0x30   : > { %1085 = vmatprep.mubr.msk.f32.mxu0 %vm328_vm0, %v300_v37 }
  0x32   : > { %1054 = vmatmul.mubr.msk.f32.gmra.mrb[12].mxu1 %vm328_vm0, %v321_v38 }
  0x33   : > { %1086 = vmatmul.mubr.msk.f32.gmra.mrb[12].mxu0 %vm328_vm0, %v301_v39  ;;  %1056 = vmatprep.mubr.msk.f32.mxu1 %vm328_vm0, %v322_v40 }
  0x34   : > { %1088 = vmatprep.mubr.msk.f32.mxu0 %vm328_vm0, %v302_v41 }
  0x36   : > { %1057 = vmatmul.mubr.msk.f32.gmra.mrb[14].mxu1 %vm328_vm0, %v323_v42 }
  0x37   : > { %1089 = vmatmul.mubr.msk.f32.gmra.mrb[14].mxu0 %vm328_vm0, %v303_v43  ;;  %1123 = vmatprep.mubr.msk.f32.mxu1 %vm1289_vm1, %v1290_v45 }
  0xed   : > { %v1037_v46 = vpop.f32.mrb[0].mxu1 }
  0xee   : > { %v1069_v47 = vpop.f32.mrb[0].mxu0  ;;  %v443_v49 = vpop.f32.mrb[1].mxu1 }
  0xef   : > { %v642_v50 = vadd.f32 %v1069_v47, %v1037_v46  ;;  %v636_v51 = vpop.f32.mrb[1].mxu0 }
  0xf0   : > { %v637_v52 = vadd.f32 %v636_v51, %v443_v49 }
  0xf1   : > { %v723_v53 = vadd.f32 %v1478_v48, %v642_v50  ;;  %v1040_v54 = vpop.f32.mrb[2].mxu1 }
  0xf2   : > { %v722_v55 = vadd.f32 %v1478_v48, %v637_v52  ;;  %v1072_v56 = vpop.f32.mrb[2].mxu0  ;;  %v453_v57 = vpop.f32.mrb[3].mxu1 }
  0xf3   : > { %v739_v58 = vmax.f32 %v723_v53, 0.0  ;;  %v652_v59 = vadd.f32 %v1072_v56, %v1040_v54  ;;  %v646_v60 = vpop.f32.mrb[3].mxu0 }
  0xf4   : > { %v738_v61 = vmax.f32 %v722_v55, 0.0  ;;  %v647_v62 = vadd.f32 %v646_v60, %v453_v57 }
  0xf5   : > { %v725_v63 = vadd.f32 %v1478_v48, %v652_v59  ;;  %v1043_v0 = vpop.f32.mrb[4].mxu1 }
  0xf6   : > { %v1143_v1 = vpack.c.bf16 %v739_v58, %v738_v61  ;;  %v724_v2 = vadd.f32 %v1478_v48, %v647_v62  ;;  %v1075_v3 = vpop.f32.mrb[4].mxu0  ;;  %v463_v4 = vpop.f32.mrb[5].mxu1 }
  0xf7   : > { %v741_v5 = vmax.f32 %v725_v63, 0.0  ;;  %v662_v6 = vadd.f32 %v1075_v3, %v1043_v0  ;;  %v656_v7 = vpop.f32.mrb[5].mxu0 }
  0xf8   : > { %v740_v8 = vmax.f32 %v724_v2, 0.0  ;;  %v657_v9 = vadd.f32 %v656_v7, %v463_v4  ;;  %1144 = vmatpush3.bf16.msra.mxu1 %v1143_v1 }
  0xf9   : > { %v727_v10 = vadd.f32 %v1478_v48, %v662_v6  ;;  %v1046_v11 = vpop.f32.mrb[6].mxu1  ;;  %1145 = vmatprep.subr.bf16.mxu1 %v1288_v44 }
  0xfa   : > { %v1146_v12 = vpack.c.bf16 %v741_v5, %v740_v8  ;;  %v726_v13 = vadd.f32 %v1478_v48, %v657_v9  ;;  %v1078_v14 = vpop.f32.mrb[6].mxu0  ;;  %v473_v15 = vpop.f32.mrb[7].mxu1  ;;  %v754_v9 = vld [vmem:[%s287_s29] sm:$0x1] }
  0xfb   : > { %v743_v16 = vmax.f32 %v727_v10, 0.0  ;;  %v672_v17 = vadd.f32 %v1078_v14, %v1046_v11  ;;  %v666_v18 = vpop.f32.mrb[7].mxu0  ;;  %v825_v10 = vlaneseq }
  0xfc   : > { %v742_v19 = vmax.f32 %v726_v13, 0.0  ;;  %v667_v20 = vadd.f32 %v666_v18, %v473_v15  ;;  %1147 = vmatpush3.bf16.msra.mxu1 %v1146_v12 }
  0xfd   : > { %v729_v21 = vadd.f32 %v1478_v48, %v672_v17  ;;  %v1049_v22 = vpop.f32.mrb[8].mxu1  ;;  %1148 = vmatprep.subr.bf16.mxu1 %v1288_v44  ;;  %v826_v11 = vshrl.u32 %v825_v10, 7 }
  0xfe   : > { %v1149_v23 = vpack.c.bf16 %v743_v16, %v742_v19  ;;  %v728_v24 = vadd.f32 %v1478_v48, %v667_v20  ;;  %v1081_v25 = vpop.f32.mrb[8].mxu0  ;;  %v483_v26 = vpop.f32.mrb[9].mxu1 }
  0xff   : > { %v745_v27 = vmax.f32 %v729_v21, 0.0  ;;  %v682_v28 = vadd.f32 %v1081_v25, %v1049_v22  ;;  %v676_v29 = vpop.f32.mrb[9].mxu0  ;;  %v827_v12 = vsub.s32 0, %v826_v11 }
 0x100   : > { %v744_v30 = vmax.f32 %v728_v24, 0.0  ;;  %v677_v31 = vadd.f32 %v676_v29, %v483_v26  ;;  %1150 = vmatpush3.bf16.msra.mxu1 %v1149_v23 }
 0x101   : > { %v731_v32 = vadd.f32 %v1478_v48, %v682_v28  ;;  %v1052_v33 = vpop.f32.mrb[10].mxu1  ;;  %1151 = vmatprep.subr.bf16.mxu1 %v1288_v44 }
 0x102   : > { %v1152_v34 = vpack.c.bf16 %v745_v27, %v744_v30  ;;  %v730_v35 = vadd.f32 %v1478_v48, %v677_v31  ;;  %v1084_v36 = vpop.f32.mrb[10].mxu0  ;;  %v493_v37 = vpop.f32.mrb[11].mxu1 }
 0x103   : > { %v747_v38 = vmax.f32 %v731_v32, 0.0  ;;  %v692_v39 = vadd.f32 %v1084_v36, %v1052_v33  ;;  %v686_v40 = vpop.f32.mrb[11].mxu0 }
 0x104   : > { %v746_v41 = vmax.f32 %v730_v35, 0.0  ;;  %v687_v42 = vadd.f32 %v686_v40, %v493_v37  ;;  %1153 = vmatpush3.bf16.msra.mxu1 %v1152_v34 }
 0x105   : > { %v733_v43 = vadd.f32 %v1478_v48, %v692_v39  ;;  %v1055_v45 = vpop.f32.mrb[12].mxu1  ;;  %1154 = vmatprep.subr.bf16.mxu1 %v1288_v44 }
 0x106   : > { %v1155_v46 = vpack.c.bf16 %v747_v38, %v746_v41  ;;  %v732_v47 = vadd.f32 %v1478_v48, %v687_v42  ;;  %v1087_v49 = vpop.f32.mrb[12].mxu0  ;;  %v503_v50 = vpop.f32.mrb[13].mxu1 }
 0x107   : > { %v749_v51 = vmax.f32 %v733_v43, 0.0  ;;  %v702_v52 = vadd.f32 %v1087_v49, %v1055_v45  ;;  %v696_v53 = vpop.f32.mrb[13].mxu0 }
 0x108   : > { %v748_v54 = vmax.f32 %v732_v47, 0.0  ;;  %v697_v55 = vadd.f32 %v696_v53, %v503_v50  ;;  %1156 = vmatpush3.bf16.msra.mxu1 %v1155_v46 }
 0x109   : > { %v735_v56 = vadd.f32 %v1478_v48, %v702_v52  ;;  %v1058_v57 = vpop.f32.mrb[14].mxu1  ;;  %1157 = vmatprep.subr.bf16.mxu1 %v1288_v44 }
 0x10a   : > { %v1158_v58 = vpack.c.bf16 %v749_v51, %v748_v54  ;;  %v734_v59 = vadd.f32 %v1478_v48, %v697_v55  ;;  %v1090_v60 = vpop.f32.mrb[14].mxu0  ;;  %v513_v61 = vpop.f32.mrb[15].mxu1 }
 0x10b   : > { %v751_v62 = vmax.f32 %v735_v56, 0.0  ;;  %v712_v63 = vadd.f32 %v1090_v60, %v1058_v57  ;;  %v706_v0 = vpop.f32.mrb[15].mxu0 }
 0x10c   : > { %v750_v1 = vmax.f32 %v734_v59, 0.0  ;;  %v707_v2 = vadd.f32 %v706_v0, %v513_v61  ;;  %1159 = vmatpush3.bf16.msra.mxu1 %v1158_v58 }
 0x10d   : > { %v737_v3 = vadd.f32 %v1478_v48, %v712_v63  ;;  %1160 = vmatprep.subr.bf16.mxu1 %v1288_v44 }
 0x10e   : > { %v1161_v4 = vpack.c.bf16 %v751_v62, %v750_v1  ;;  %v736_v5 = vadd.f32 %v1478_v48, %v707_v2 }
 0x10f   : > { %v753_v6 = vmax.f32 %v737_v3, 0.0 }
 0x110   : > { %v752_v7 = vmax.f32 %v736_v5, 0.0  ;;  %1162 = vmatpush3.bf16.msra.mxu1 %v1161_v4 }
 0x111   : > { %1163 = vmatprep.subr.bf16.mxu1 %v1288_v44 }
 0x112   : > { %v1164_v8 = vpack.c.bf16 %v753_v6, %v752_v7 }
 0x114   : > { %1165 = vmatpush3.bf16.msra.mxu1 %v1164_v8 }
 0x117   : > { %1124 = vmatmul.mubr.f32.vlgmr.msra.gmra.mrb[16].mxu1 %v754_v9 }
 0x1ea   : > { %v821_v48 = vpop.f32.mrb[16].mxu1 }
 0x1eb   : > { %v828_v13 = vrot.slane %v821_v48, %v827_v12  ;;  %v1125_v44 = vpop.f32.mrb[17].mxu1 }
 0x1ed   : > { %829 = vst.msk [vmem:[%s272_s12] sm:$0xff] %vm328_vm0, %v828_v13 }
 0x1ee   : > { %1237 = shalt.err (!%p1234_p4)
}
 0x1ef   : > { %s1238_s26 = scalar_lea.hbm %s1513_s17, 128  ;;  %s1242_s9 = scalar_lea.hbm %s1562_s6, 256 }
 0x1f0   : > { %p1239_p7 = scmp.ne.s32.totalorder %s1513_s17, %s1238_s26  ;;  %p1243_p10 = scmp.lt.u32.totalorder %s1513_s17, %s1562_s6 }
 0x1f1   : > { %p1244_p11 = scmp.lt.u32.totalorder %s1242_s9, %s1238_s26  ;;  %p1246_p13 = scmp.lt.u32.totalorder %s1238_s26, %s1513_s17 }
 0x1f2   : > { %p1240_p8 = pnand %p1239_p7, %p1365_p5 }
 0x1f3   : > { %p1245_p12 = por %p1244_p11, %p1243_p10 }
 0x1f4   : > { %p1241_p9 = pneg %p1240_p8 }
 0x1f5   : > { %p1247_p0 = por %p1246_p13, %p1245_p12 }
 0x1f7   : > { %p1248_p1 = pnand %p1247_p0, %p1241_p9 }
 0x1f9   : > { %1251 = shalt.err (!%p1248_p1)
}
 0x1fa   : > { %1182 = dma.vmem_to_hbm [thread:$0]  (%p1365_p5), %s1515_s13, 128, %s1513_s17, %s831_s18  }
 0x1fb PF: > { %p1188_p2 = scmp.ge.s32.totalorder %s1286_s24, 2  ;;  %s856_s12 = sand.u32 1, %s1274_s21  }
 0x1fc   : > { %s857_s14 = scalar_lea.sflag [#allocation3], %s856_s12 }
 0x1fd   : > { %p1185_p3 = pnand %p1188_p2, %p1369_p6 }
 0x1ff   : > { %1269 = dma.done.wait (!%p1185_p3), %s857_s14, 128  }
 0x200   : > { %1271 = vsyncadd (!%p1185_p3), %s857_s14, 4294967168  ;;  %p16_p4 = scmp.ge.s32.totalorder %s1352_s27, 4   ;;  %s1565_s21 = smov %s1278_s22 }
 0x201   : > { %s1566_s22 = smov %s1282_s23  ;;  %s1567_s23 = smov %s1363_s30 }
 0x202   : > { %s1568_s24 = smov %s1352_s27  ;;  %18 = sbr.rel (!%p16_p4) target bundleno = 3 (0x3), region = 85 }
 0x209   :  { %862 = vsyncpa [#allocation3], 1 }
 0x20a   :  { %864 = vsyncpa [#allocation3 + $0x1], 1 }

</bundles_post_ra>
